<compile_context>
chip_gen: v5e
topology: v5e:2x2
jax: 0.10.0
libtpu: 0.0.40
codegen_flags: <defaults>
</compile_context>

<pallas_src>
import jax
import jax.numpy as jnp
from jax.experimental import pallas as pl
from jax.experimental.pallas import tpu as pltpu

BN_EPS = 1e-5


# -----------------------------------------------------------------------------
# Kernel: (Linear -> ReLU) x2 -> Linear   (BN already folded into the Linears)
# -----------------------------------------------------------------------------
def textcnn_kernel(x_ref, w1_ref, b1_ref, w2_ref, b2_ref, w3_ref, b3_ref, o_ref):
    x = x_ref[...]

    # block 1: Linear (BN folded) + ReLU   (Dropout = identity in eval)
    h = jnp.dot(x, w1_ref[...], preferred_element_type=jnp.float32) + b1_ref[...]
    h = jnp.maximum(h, 0.0)

    # block 2: Linear (BN folded) + ReLU
    h = jnp.dot(h.astype(w2_ref.dtype), w2_ref[...],
                preferred_element_type=jnp.float32) + b2_ref[...]
    h = jnp.maximum(h, 0.0)

    # head: Linear(H2, num_classes)  (zero-padded to 128 lanes -> dense store)
    o_ref[...] = (jnp.dot(h.astype(w3_ref.dtype), w3_ref[...],
                          preferred_element_type=jnp.float32)
                  + b3_ref[...]).astype(o_ref.dtype)


# -----------------------------------------------------------------------------
# Wrapper
# -----------------------------------------------------------------------------
def _fold_bn(w, b, gamma, beta, mean, var, eps=BN_EPS):
    """Fold eval-mode BatchNorm1d into the preceding Linear (x @ W + b layout)."""
    scale = gamma * jax.lax.rsqrt(var + eps)        # (1, out)
    return w * scale, (b - mean) * scale + beta


def textcnn_forward(x, params, *, compute_dtype=jnp.float32, tile_b=256):
    """Fused eval-mode forward. x: (B, input_dim) f32. Returns (B, num_classes) f32."""
    (w1, b1, g1, bt1, m1, v1,
     w2, b2, g2, bt2, m2, v2,
     w3, b3) = params

    B, in_dim = x.shape
    h1 = w1.shape[1]
    h2 = w2.shape[1]
    num_classes = w3.shape[1]

    # --- fold BN into Linear weights/biases (wrapper-side, once) ---
    w1f, b1f = _fold_bn(w1, b1, g1, bt1, m1, v1)
    w2f, b2f = _fold_bn(w2, b2, g2, bt2, m2, v2)

    # --- lane-dense head: pad output columns to a multiple of 128 ---
    n_out = max(128, ((num_classes + 127) // 128) * 128)
    w3p = jnp.pad(w3, ((0, 0), (0, n_out - num_classes)))
    b3p = jnp.pad(b3, ((0, 0), (0, n_out - num_classes)))

    # --- MXU-operand dtype (biases / accumulation / epilogue stay f32) ---
    w1c = w1f.astype(compute_dtype)
    w2c = w2f.astype(compute_dtype)
    w3c = w3p.astype(compute_dtype)
    b1f = b1f.astype(jnp.float32)
    b2f = b2f.astype(jnp.float32)
    b3p = b3p.astype(jnp.float32)

    # --- pad batch to a multiple of the MXU-aligned tile (no ragged tail) ---
    b_pad = pl.cdiv(B, tile_b) * tile_b
    x_pad = jnp.pad(x, ((0, b_pad - B), (0, 0))).astype(compute_dtype)
    grid = (b_pad // tile_b,)

    in_specs = [
        pl.BlockSpec((tile_b, in_dim), lambda i: (i, 0)),   # x: batch-tiled
        pl.BlockSpec(w1c.shape, lambda i: (0, 0)),          # weights/biases:
        pl.BlockSpec(b1f.shape, lambda i: (0, 0)),          # fetched once,
        pl.BlockSpec(w2c.shape, lambda i: (0, 0)),          # VMEM-resident
        pl.BlockSpec(b2f.shape, lambda i: (0, 0)),
        pl.BlockSpec(w3c.shape, lambda i: (0, 0)),
        pl.BlockSpec(b3p.shape, lambda i: (0, 0)),
    ]
    out_specs = pl.BlockSpec((tile_b, n_out), lambda i: (i, 0))

    itemsize = jnp.dtype(compute_dtype).itemsize
    flops = 2 * b_pad * (in_dim * h1 + h1 * h2 + h2 * n_out)
    bytes_accessed = (x_pad.size * itemsize
                      + (w1c.size + w2c.size + w3c.size) * itemsize
                      + (b1f.size + b2f.size + b3p.size) * 4
                      + b_pad * n_out * 4)

    out = pl.pallas_call(
        textcnn_kernel,
        out_shape=jax.ShapeDtypeStruct((b_pad, n_out), jnp.float32),
        grid=grid,
        in_specs=in_specs,
        out_specs=out_specs,
        compiler_params=pltpu.CompilerParams(
            dimension_semantics=("parallel",)),
        cost_estimate=pl.CostEstimate(
            flops=flops, transcendentals=0, bytes_accessed=bytes_accessed),
    )(x_pad, w1c, b1f, w2c, b2f, w3c, b3p)

    return out[:B, :num_classes]


# -----------------------------------------------------------------------------
# Params / reference
# -----------------------------------------------------------------------------
def init_params(key, input_dim, hidden_dims=(128, 64), num_classes=1):
    """Deterministic init mimicking PyTorch defaults (Linear: U(-1/sqrt(fan_in), +))."""
    dims = [input_dim] + list(hidden_dims) + [num_classes]
    keys = jax.random.split(key, 2 * (len(dims) - 1))

    def linear(kw, kb, fan_in, fan_out):
        bound = 1.0 / jnp.sqrt(fan_in)
        # Stored pre-transposed as (in, out) for x @ W.
        w = jax.random.uniform(kw, (fan_in, fan_out), jnp.float32, -bound, bound)
        b = jax.random.uniform(kb, (1, fan_out), jnp.float32, -bound, bound)
        return w, b

    w1, b1 = linear(keys[0], keys[1], dims[0], dims[1])
    w2, b2 = linear(keys[2], keys[3], dims[1], dims[2])
    w3, b3 = linear(keys[4], keys[5], dims[2], dims[3])

    # BatchNorm1d defaults: weight=1, bias=0, running_mean=0, running_var=1.
    def bn(h):
        return (jnp.ones((1, h), jnp.float32),   # gamma
                jnp.zeros((1, h), jnp.float32),  # beta
                jnp.zeros((1, h), jnp.float32),  # running_mean
                jnp.ones((1, h), jnp.float32))   # running_var

    g1, bt1, m1, v1 = bn(dims[1])
    g2, bt2, m2, v2 = bn(dims[2])

    return (w1, b1, g1, bt1, m1, v1,
            w2, b2, g2, bt2, m2, v2,
            w3, b3)


def reference_forward(x, params):
    """Pure-JAX f32 reference of the same eval-mode forward (unfolded BN)."""
    (w1, b1, g1, bt1, m1, v1,
     w2, b2, g2, bt2, m2, v2,
     w3, b3) = params
    h = x @ w1 + b1
    h = (h - m1) * jax.lax.rsqrt(v1 + BN_EPS) * g1 + bt1
    h = jnp.maximum(h, 0.0)
    h = h @ w2 + b2
    h = (h - m2) * jax.lax.rsqrt(v2 + BN_EPS) * g2 + bt2
    h = jnp.maximum(h, 0.0)
    return h @ w3 + b3


if __name__ == "__main__":
    key = jax.random.PRNGKey(0)
    k_x, k_p = jax.random.split(key)

    B = 8            # batch
    INPUT_DIM = 32   # text feature dimension
    HIDDEN = (128, 64)
    NUM_CLASSES = 1

    x = jax.random.normal(k_x, (B, INPUT_DIM), dtype=jnp.float32)
    params = init_params(k_p, INPUT_DIM, HIDDEN, NUM_CLASSES)

    ref = reference_forward(x, params)

    # f32 path: tight check against the unfused reference.
    out_f32 = jax.block_until_ready(
        textcnn_forward(x, params, compute_dtype=jnp.float32))
    assert out_f32.shape == (B, NUM_CLASSES)
    assert jnp.allclose(out_f32, ref, atol=1e-4, rtol=1e-4), "f32 mismatch vs reference"

    # bf16 MXU-operand path (halves x/weight HBM traffic): loose check.
    out_bf16 = jax.block_until_ready(
        textcnn_forward(x, params, compute_dtype=jnp.bfloat16))
    assert out_bf16.shape == (B, NUM_CLASSES)
    assert jnp.allclose(out_bf16, ref, atol=1e-1, rtol=1e-1), "bf16 mismatch vs reference"

    print("KERNEL_OK")
</pallas_src>

<mosaic_0001>
module attributes {stable_mosaic.version = 11 : i64} {
  func.func @textcnn_kernel(%arg0: i32, %arg1: memref<256x32xf32, #tpu.memory_space<vmem>>, %arg2: memref<32x128xf32, #tpu.memory_space<vmem>>, %arg3: memref<1x128xf32, #tpu.memory_space<vmem>>, %arg4: memref<128x64xf32, #tpu.memory_space<vmem>>, %arg5: memref<1x64xf32, #tpu.memory_space<vmem>>, %arg6: memref<64x128xf32, #tpu.memory_space<vmem>>, %arg7: memref<1x128xf32, #tpu.memory_space<vmem>>, %arg8: memref<256x128xf32, #tpu.memory_space<vmem>>) attributes {dimension_semantics = [#tpu.dimension_semantics<parallel>], iteration_bounds = array<i64: 1>, scalar_prefetch = 0 : i64, scratch_operands = 0 : i64, tpu.core_type = #tpu.core_type<tc>, window_params = [{transform_indices = @transform_0, window_bounds = array<i64: 256, 32>}, {pipeline_mode = #tpu.pipeline_mode<synchronous>, transform_indices = @transform_1, window_bounds = array<i64: 32, 128>}, {pipeline_mode = #tpu.pipeline_mode<synchronous>, transform_indices = @transform_2, window_bounds = array<i64: 1, 128>}, {pipeline_mode = #tpu.pipeline_mode<synchronous>, transform_indices = @transform_3, window_bounds = array<i64: 128, 64>}, {pipeline_mode = #tpu.pipeline_mode<synchronous>, transform_indices = @transform_4, window_bounds = array<i64: 1, 64>}, {pipeline_mode = #tpu.pipeline_mode<synchronous>, transform_indices = @transform_5, window_bounds = array<i64: 64, 128>}, {pipeline_mode = #tpu.pipeline_mode<synchronous>, transform_indices = @transform_6, window_bounds = array<i64: 1, 128>}, {transform_indices = @transform_7, window_bounds = array<i64: 256, 128>}]} {
    %c0 = arith.constant 0 : index
    %c0_0 = arith.constant 0 : index
    %0 = vector.load %arg1[%c0, %c0_0] : memref<256x32xf32, #tpu.memory_space<vmem>>, vector<256x32xf32>
    %c0_1 = arith.constant 0 : index
    %c0_2 = arith.constant 0 : index
    %1 = vector.load %arg2[%c0_1, %c0_2] : memref<32x128xf32, #tpu.memory_space<vmem>>, vector<32x128xf32>
    %cst = arith.constant dense<0.000000e+00> : vector<256x128xf32>
    %2 = tpu.matmul %0, %1, %cst {dimension_numbers = #tpu.dot_dimension_numbers<[1], [0], [0], [1], [0, 0, 1, 1], [], []>} : vector<256x32xf32>, vector<32x128xf32>, vector<256x128xf32> -> vector<256x128xf32>
    %c0_3 = arith.constant 0 : index
    %c0_4 = arith.constant 0 : index
    %3 = vector.load %arg3[%c0_3, %c0_4] : memref<1x128xf32, #tpu.memory_space<vmem>>, vector<1x128xf32>
    %4 = vector.broadcast %3 : vector<1x128xf32> to vector<256x128xf32>
    %5 = arith.addf %2, %4 : vector<256x128xf32>
    %cst_5 = arith.constant 0.000000e+00 : f32
    %6 = vector.broadcast %cst_5 : f32 to vector<256x128xf32>
    %7 = arith.maximumf %5, %6 : vector<256x128xf32>
    %c0_6 = arith.constant 0 : index
    %c0_7 = arith.constant 0 : index
    %8 = vector.load %arg4[%c0_6, %c0_7] : memref<128x64xf32, #tpu.memory_space<vmem>>, vector<128x64xf32>
    %cst_8 = arith.constant dense<0.000000e+00> : vector<256x64xf32>
    %9 = tpu.matmul %7, %8, %cst_8 {dimension_numbers = #tpu.dot_dimension_numbers<[1], [0], [0], [1], [0, 0, 1, 1], [], []>} : vector<256x128xf32>, vector<128x64xf32>, vector<256x64xf32> -> vector<256x64xf32>
    %c0_9 = arith.constant 0 : index
    %c0_10 = arith.constant 0 : index
    %10 = vector.load %arg5[%c0_9, %c0_10] : memref<1x64xf32, #tpu.memory_space<vmem>>, vector<1x64xf32>
    %11 = vector.broadcast %10 : vector<1x64xf32> to vector<256x64xf32>
    %12 = arith.addf %9, %11 : vector<256x64xf32>
    %cst_11 = arith.constant 0.000000e+00 : f32
    %13 = vector.broadcast %cst_11 : f32 to vector<256x64xf32>
    %14 = arith.maximumf %12, %13 : vector<256x64xf32>
    %c0_12 = arith.constant 0 : index
    %c0_13 = arith.constant 0 : index
    %15 = vector.load %arg6[%c0_12, %c0_13] : memref<64x128xf32, #tpu.memory_space<vmem>>, vector<64x128xf32>
    %cst_14 = arith.constant dense<0.000000e+00> : vector<256x128xf32>
    %16 = tpu.matmul %14, %15, %cst_14 {dimension_numbers = #tpu.dot_dimension_numbers<[1], [0], [0], [1], [0, 0, 1, 1], [], []>} : vector<256x64xf32>, vector<64x128xf32>, vector<256x128xf32> -> vector<256x128xf32>
    %c0_15 = arith.constant 0 : index
    %c0_16 = arith.constant 0 : index
    %17 = vector.load %arg7[%c0_15, %c0_16] : memref<1x128xf32, #tpu.memory_space<vmem>>, vector<1x128xf32>
    %18 = vector.broadcast %17 : vector<1x128xf32> to vector<256x128xf32>
    %19 = arith.addf %16, %18 : vector<256x128xf32>
    %c0_17 = arith.constant 0 : index
    %c0_18 = arith.constant 0 : index
    %20 = vector.load %arg8[%c0_17, %c0_18] : memref<256x128xf32, #tpu.memory_space<vmem>>, vector<256x128xf32>
    tpu.vector_store %arg8[%c0_17, %c0_18], %19 {strides = array<i32>} : memref<256x128xf32, #tpu.memory_space<vmem>>, vector<256x128xf32>,
    return
  }
  func.func @transform_0(%arg0: i32) -> (i32, i32) {
    %c0_i32 = arith.constant 0 : i32
    %c0_i32_0 = arith.constant 0 : i32
    return %arg0, %c0_i32 : i32, i32
  }
  func.func @transform_1(%arg0: i32) -> (i32, i32) {
    %c0_i32 = arith.constant 0 : i32
    %c0_i32_0 = arith.constant 0 : i32
    %c0_i32_1 = arith.constant 0 : i32
    return %c0_i32, %c0_i32_0 : i32, i32
  }
  func.func @transform_2(%arg0: i32) -> (i32, i32) {
    %c0_i32 = arith.constant 0 : i32
    %c0_i32_0 = arith.constant 0 : i32
    %c0_i32_1 = arith.constant 0 : i32
    return %c0_i32, %c0_i32_0 : i32, i32
  }
  func.func @transform_3(%arg0: i32) -> (i32, i32) {
    %c0_i32 = arith.constant 0 : i32
    %c0_i32_0 = arith.constant 0 : i32
    %c0_i32_1 = arith.constant 0 : i32
    return %c0_i32, %c0_i32_0 : i32, i32
  }
  func.func @transform_4(%arg0: i32) -> (i32, i32) {
    %c0_i32 = arith.constant 0 : i32
    %c0_i32_0 = arith.constant 0 : i32
    %c0_i32_1 = arith.constant 0 : i32
    return %c0_i32, %c0_i32_0 : i32, i32
  }
  func.func @transform_5(%arg0: i32) -> (i32, i32) {
    %c0_i32 = arith.constant 0 : i32
    %c0_i32_0 = arith.constant 0 : i32
    %c0_i32_1 = arith.constant 0 : i32
    return %c0_i32, %c0_i32_0 : i32, i32
  }
  func.func @transform_6(%arg0: i32) -> (i32, i32) {
    %c0_i32 = arith.constant 0 : i32
    %c0_i32_0 = arith.constant 0 : i32
    %c0_i32_1 = arith.constant 0 : i32
    return %c0_i32, %c0_i32_0 : i32, i32
  }
  func.func @transform_7(%arg0: i32) -> (i32, i32) {
    %c0_i32 = arith.constant 0 : i32
    %c0_i32_0 = arith.constant 0 : i32
    return %arg0, %c0_i32 : i32, i32
  }
}

</mosaic_0001>

<bundles_post_ra>
// kernel: tpu_custom_call.1
= control target key start
LH: loop header
LB: loop body
LE: loop exit
PB: predicated region body
PF: predicated region fallthrough
CT: control target
= control target key end

     0   :  { %s1271_s0 = inlined_call_operand.vmem [shape: f32[256,32], index: 0, kind: input, shape index: {}]   ;;  %s1272_s1 = inlined_call_operand.vmem [shape: f32[32,128], index: 1, kind: input, shape index: {}]   ;;  %s1273_s2 = inlined_call_operand.vmem [shape: f32[1,128], index: 2, kind: input, shape index: {}]   ;;  %s1274_s3 = inlined_call_operand.vmem [shape: f32[128,64], index: 3, kind: input, shape index: {}]   ;;  %s1275_s4 = inlined_call_operand.vmem [shape: f32[1,64], index: 4, kind: input, shape index: {}]   ;;  %s1276_s5 = inlined_call_operand.vmem [shape: f32[64,128], index: 5, kind: input, shape index: {}]   ;;  %s1277_s6 = inlined_call_operand.vmem [shape: f32[1,128], index: 6, kind: input, shape index: {}]   ;;  %s1278_s7 = inlined_call_operand.hbm [shape: f32[256,128], index: 7, kind: output, shape index: {}]  }
   0x1   :  { %v62_v0 = vld [vmem:[%s1272_s1 + $0x18] sm:$0xff]  ;;  %v61_v1 = vld [vmem:[%s1272_s1 + $0x10] sm:$0xff]  ;;  %v60_v2 = vld [vmem:[%s1272_s1 + $0x8] sm:$0xff] }
   0x2   :  { %176 = vmatpush.msra.mxu0 %v62_v0  ;;  %810 = vmatpush.msra.mxu3 %v62_v0  ;;  %v59_v3 = vld [vmem:[%s1272_s1] sm:$0xff] }
   0x4   :  { %177 = vmatpush.msra.mxu0 %v61_v1  ;;  %811 = vmatpush.msra.mxu3 %v61_v1 }
   0x5   :  { %12 = vsyncpa [#allocation3], 0  ;;  %v27_v4 = vld [vmem:[%s1271_s0] sm:$0xff]  ;;  %vm67_vm0 = vcmask 261120   ;;  %v28_v5 = vld [vmem:[%s1271_s0 + $0x8] sm:$0xff]  ;;  %vm486_vm1 = vcmask 523264  }
   0x6   :  { %178 = vmatpush.msra.mxu0 %v60_v2  ;;  %812 = vmatpush.msra.mxu3 %v60_v2  ;;  %v29_v6 = vld [vmem:[%s1271_s0 + $0x10] sm:$0xff]  ;;  %v30_v7 = vld [vmem:[%s1271_s0 + $0x18] sm:$0xff]  ;;  %v31_v8 = vld [vmem:[%s1271_s0 + $0x20] sm:$0xff]  ;;  %s734_s25 = sshll.u32 %s1278_s7, 4  ;;  %s871_s26 = smov 128   ;;  %s735_s25 = int_to_ptr.hbm [resolvable:$true] %s734_s25 }
   0x7   :  { %v32_v9 = vld [vmem:[%s1271_s0 + $0x28] sm:$0xff]  ;;  %v33_v10 = vld [vmem:[%s1271_s0 + $0x30] sm:$0xff]  ;;  %v34_v11 = vld [vmem:[%s1271_s0 + $0x38] sm:$0xff]  ;;  %s872_s27 = smov 8  }
   0x8   :  { %179 = vmatpush.msra.mxu0 %v59_v3  ;;  %813 = vmatpush.msra.mxu3 %v59_v3  ;;  %v35_v12 = vld [vmem:[%s1271_s0 + $0x40] sm:$0xff]  ;;  %v324_v13 = vld [vmem:[%s1274_s3 + $0x78] sm:$0xff]  ;;  %v323_v14 = vld [vmem:[%s1274_s3 + $0x70] sm:$0xff] }
   0x9   :  { %746 = vmatmul.msk.f32.vlgmr.msra.gmra.mxu0 %vm67_vm0, %v27_v4  ;;  %329 = vmatpush.msra.mxu1 %v324_v13  ;;  %v322_v15 = vld [vmem:[%s1274_s3 + $0x68] sm:$0xff]  ;;  %v321_v17 = vld [vmem:[%s1274_s3 + $0x60] sm:$0xff]  ;;  %v320_v18 = vld [vmem:[%s1274_s3 + $0x58] sm:$0xff] }
   0xa   :  { %814 = vmatpush.msrb.mxu3 %v324_v13  ;;  %v36_v16 = vld [vmem:[%s1271_s0 + $0x48] sm:$0xff]  ;;  %v319_v19 = vld [vmem:[%s1274_s3 + $0x50] sm:$0xff]  ;;  %v317_v22 = vld [vmem:[%s1274_s3 + $0x40] sm:$0xff] }
   0xb   :  { %330 = vmatpush.msra.mxu1 %v323_v14  ;;  %v318_v20 = vld [vmem:[%s1274_s3 + $0x48] sm:$0xff]  ;;  %v37_v21 = vld [vmem:[%s1271_s0 + $0x50] sm:$0xff]  ;;  %v316_v23 = vld [vmem:[%s1274_s3 + $0x38] sm:$0xff] }
   0xc   :  { %815 = vmatpush.msrb.mxu3 %v323_v14  ;;  %v315_v24 = vld [vmem:[%s1274_s3 + $0x30] sm:$0xff]  ;;  %v314_v25 = vld [vmem:[%s1274_s3 + $0x28] sm:$0xff]  ;;  %v38_v26 = vld [vmem:[%s1271_s0 + $0x58] sm:$0xff] }
   0xd   :  { %331 = vmatpush.msra.mxu1 %v322_v15  ;;  %v313_v27 = vld [vmem:[%s1274_s3 + $0x20] sm:$0xff]  ;;  %v312_v28 = vld [vmem:[%s1274_s3 + $0x18] sm:$0xff]  ;;  %v311_v29 = vld [vmem:[%s1274_s3 + $0x10] sm:$0xff] }
   0xe   :  { %816 = vmatpush.msrb.mxu3 %v322_v15  ;;  %v39_v30 = vld [vmem:[%s1271_s0 + $0x60] sm:$0xff]  ;;  %v310_v31 = vld [vmem:[%s1274_s3 + $0x8] sm:$0xff]  ;;  %v41_v34 = vld [vmem:[%s1271_s0 + $0x70] sm:$0xff] }
   0xf   :  { %332 = vmatpush.msra.mxu1 %v321_v17  ;;  %v309_v32 = vld [vmem:[%s1274_s3] sm:$0xff]  ;;  %v40_v33 = vld [vmem:[%s1271_s0 + $0x68] sm:$0xff]  ;;  %v42_v35 = vld [vmem:[%s1271_s0 + $0x78] sm:$0xff] }
  0x10   :  { %817 = vmatpush.msrb.mxu3 %v321_v17  ;;  %v1040_v36 = vld [vmem:[%s1273_s2] ss:$0 sm:$0xff]  ;;  %v44_v42 = vld [vmem:[%s1271_s0 + $0x88] sm:$0xff]  ;;  %v45_v46 = vld [vmem:[%s1271_s0 + $0x90] sm:$0xff] }
  0x11   :  { %747 = vmatmul.msk.f32.gmra.mxu0 %vm67_vm0, %v28_v5  ;;  %333 = vmatpush.msra.mxu1 %v320_v18  ;;  %v43_v38 = vld [vmem:[%s1271_s0 + $0x80] sm:$0xff]  ;;  %v46_v50 = vld [vmem:[%s1271_s0 + $0x98] sm:$0xff]  ;;  %v52_v57 = vld [vmem:[%s1271_s0 + $0xc8] sm:$0xff] }
  0x12   :  { %818 = vmatpush.msrb.mxu3 %v320_v18  ;;  %v47_v54 = vld [vmem:[%s1271_s0 + $0xa0] sm:$0xff]  ;;  %v48_v59 = vld [vmem:[%s1271_s0 + $0xa8] sm:$0xff]  ;;  %v53_v62 = vld [vmem:[%s1271_s0 + $0xd0] sm:$0xff] }
  0x13   :  { %334 = vmatpush.msra.mxu1 %v319_v19  ;;  %771 = vmatmul.msk.f32.vlgmr.msra.gmra.mxu3 %vm67_vm0, %v52_v57  ;;  %v49_v0 = vld [vmem:[%s1271_s0 + $0xb0] sm:$0xff]  ;;  %v54_v3 = vld [vmem:[%s1271_s0 + $0xd8] sm:$0xff]  ;;  %v56_v13 = vld [vmem:[%s1271_s0 + $0xe8] sm:$0xff] }
  0x14   :  { %819 = vmatpush.msrb.mxu3 %v319_v19  ;;  %v50_v5 = vld [vmem:[%s1271_s0 + $0xb8] sm:$0xff]  ;;  %v57_v17 = vld [vmem:[%s1271_s0 + $0xf0] sm:$0xff] }
  0x15   :  { %335 = vmatpush.msra.mxu1 %v318_v20 }
  0x16   :  { %820 = vmatpush.msrb.mxu3 %v318_v20 }
  0x17   :  { %336 = vmatpush.msra.mxu1 %v317_v22 }
  0x18   :  { %821 = vmatpush.msrb.mxu3 %v317_v22  ;;  %v481_v22 = vld [vmem:[%s1276_s5 + $0x38] sm:$0xff] }
  0x19   :  { %748 = vmatmul.msk.f32.gmra.mxu0 %vm67_vm0, %v29_v6  ;;  %337 = vmatpush.msra.mxu1 %v316_v23 }
  0x1a   :  { %822 = vmatpush.msrb.mxu3 %v316_v23  ;;  %591 = vmatpush.msra.mxu2 %v481_v22 }
  0x1b   :  { %338 = vmatpush.msra.mxu1 %v315_v24  ;;  %772 = vmatmul.msk.f32.gmra.mxu3 %vm67_vm0, %v53_v62 }
  0x1c   :  { %823 = vmatpush.msrb.mxu3 %v315_v24 }
  0x1d   :  { %339 = vmatpush.msra.mxu1 %v314_v25 }
  0x1e   :  { %824 = vmatpush.msrb.mxu3 %v314_v25  ;;  %v480_v25 = vld [vmem:[%s1276_s5 + $0x30] sm:$0xff] }
  0x1f   :  { %340 = vmatpush.msra.mxu1 %v313_v27  ;;  %592 = vmatpush.msra.mxu2 %v480_v25 }
  0x20   :  { %825 = vmatpush.msrb.mxu3 %v313_v27  ;;  %v479_v27 = vld [vmem:[%s1276_s5 + $0x28] sm:$0xff] }
  0x21   :  { %749 = vmatmul.msk.f32.gmra.mxu0 %vm67_vm0, %v30_v7  ;;  %341 = vmatpush.msra.mxu1 %v312_v28 }
  0x22   :  { %826 = vmatpush.msrb.mxu3 %v312_v28  ;;  %593 = vmatpush.msra.mxu2 %v479_v27  ;;  %v478_v28 = vld [vmem:[%s1276_s5 + $0x20] sm:$0xff] }
  0x23   :  { %342 = vmatpush.msra.mxu1 %v311_v29  ;;  %773 = vmatmul.msk.f32.gmra.mxu3 %vm67_vm0, %v54_v3 }
  0x24   :  { %827 = vmatpush.msrb.mxu3 %v311_v29  ;;  %594 = vmatpush.msra.mxu2 %v478_v28  ;;  %v477_v29 = vld [vmem:[%s1276_s5 + $0x18] sm:$0xff] }
  0x25   :  { %343 = vmatpush.msra.mxu1 %v310_v31 }
  0x26   :  { %828 = vmatpush.msrb.mxu3 %v310_v31  ;;  %595 = vmatpush.msra.mxu2 %v477_v29 }
  0x27   :  { %344 = vmatpush.msra.mxu1 %v309_v32 }
  0x28   :  { %829 = vmatpush.msrb.mxu3 %v309_v32  ;;  %v476_v32 = vld [vmem:[%s1276_s5 + $0x10] sm:$0xff] }
  0x29   :  { %750 = vmatmul.msk.f32.gmra.mxu0 %vm67_vm0, %v31_v8  ;;  %v55_v8 = vld [vmem:[%s1271_s0 + $0xe0] sm:$0xff]  ;;  %596 = vmatpush.msra.mxu2 %v476_v32 }
  0x2a   :  { %830 = vmatpush.msra.mxu3 %v481_v22 }
  0x2b   :  { %774 = vmatmul.msk.f32.gmra.mxu3 %vm67_vm0, %v55_v8 }
  0x2c   :  { %831 = vmatpush.msra.mxu3 %v480_v25 }
  0x2e   :  { %832 = vmatpush.msra.mxu3 %v479_v27 }
  0x30   :  { %833 = vmatpush.msra.mxu3 %v478_v28 }
  0x31   :  { %751 = vmatmul.msk.f32.gmra.mxu0 %vm67_vm0, %v32_v9 }
  0x32   :  { %834 = vmatpush.msra.mxu3 %v477_v29 }
  0x33   :  { %775 = vmatmul.msk.f32.gmra.mxu3 %vm67_vm0, %v56_v13 }
  0x34   :  { %835 = vmatpush.msra.mxu3 %v476_v32 }
  0x39   :  { %752 = vmatmul.msk.f32.gmra.mxu0 %vm67_vm0, %v33_v10  ;;  %v51_v10 = vld [vmem:[%s1271_s0 + $0xc0] sm:$0xff] }
  0x3b   :  { %776 = vmatmul.msk.f32.gmra.mxu3 %vm67_vm0, %v57_v17 }
  0x41   :  { %753 = vmatmul.msk.f32.gmra.mxu0 %vm67_vm0, %v34_v11 }
  0x49   :  { %754 = vmatmul.msk.f32.gmra.mxu0 %vm67_vm0, %v35_v12 }
  0x51   :  { %755 = vmatmul.msk.f32.gmra.mxu0 %vm67_vm0, %v36_v16 }
  0x59   :  { %756 = vmatmul.msk.f32.gmra.mxu0 %vm67_vm0, %v37_v21  ;;  %v58_v21 = vld [vmem:[%s1271_s0 + $0xf8] sm:$0xff] }
  0x5a   :  { %777 = vmatmul.msk.f32.gmra.mxu3 %vm67_vm0, %v58_v21 }
  0x61   :  { %757 = vmatmul.msk.f32.gmra.mxu0 %vm67_vm0, %v38_v26 }
  0x69   :  { %758 = vmatmul.msk.f32.gmra.mxu0 %vm67_vm0, %v39_v30 }
  0x71   :  { %759 = vmatmul.msk.f32.gmra.mxu0 %vm67_vm0, %v40_v33 }
  0x79   :  { %760 = vmatmul.msk.f32.gmra.mxu0 %vm67_vm0, %v41_v34  ;;  %v475_v34 = vld [vmem:[%s1276_s5 + $0x8] sm:$0xff] }
  0x7a   :  { %597 = vmatpush.msra.mxu2 %v475_v34  ;;  %836 = vmatpush.msra.mxu3 %v475_v34 }
  0x81   :  { %761 = vmatmul.msk.f32.gmra.mxu0 %vm67_vm0, %v42_v35  ;;  %v474_v35 = vld [vmem:[%s1276_s5] sm:$0xff] }
  0x82   :  { %598 = vmatpush.msra.mxu2 %v474_v35  ;;  %837 = vmatpush.msra.mxu3 %v474_v35 }
  0x86   :  { %v181_v37 = vpop.f32.mrf.mxu0 }
  0x87   :  { %v182_v39 = vadd.f32 %v1040_v36, %v181_v37 }
  0x89   :  { %762 = vmatmul.msk.f32.gmra.mxu0 %vm67_vm0, %v43_v38  ;;  %v277_v40 = vmax.f32 %v182_v39, 0.0 }
  0x8b   :  { %345 = vmatmul.f32.vlgmr.msra.gmra.mxu1 %v277_v40 }
  0x8e   :  { %v184_v41 = vpop.f32.mrf.mxu0 }
  0x8f   :  { %v185_v43 = vadd.f32 %v1040_v36, %v184_v41 }
  0x91   :  { %v278_v44 = vmax.f32 %v185_v43, 0.0  ;;  %763 = vmatmul.msk.f32.gmra.mxu0 %vm67_vm0, %v44_v42 }
  0x93   :  { %348 = vmatmul.f32.gmra.mxu1 %v278_v44 }
  0x96   :  { %v187_v45 = vpop.f32.mrf.mxu0  ;;  %v256_v25 = vpop.f32.mrf.mxu3 }
  0x97   :  { %v188_v47 = vadd.f32 %v1040_v36, %v187_v45 }
  0x99   :  { %v279_v48 = vmax.f32 %v188_v47, 0.0  ;;  %764 = vmatmul.msk.f32.gmra.mxu0 %vm67_vm0, %v45_v46  ;;  %v1149_v46 = vld [vmem:[%s1275_s4] ss:$0 sm:$0xff] }
  0x9b   :  { %351 = vmatmul.f32.gmra.mxu1 %v279_v48 }
  0x9e   :  { %v190_v49 = vpop.f32.mrf.mxu0 }
  0x9f   :  { %v191_v51 = vadd.f32 %v1040_v36, %v190_v49 }
  0xa1   :  { %v280_v52 = vmax.f32 %v191_v51, 0.0  ;;  %765 = vmatmul.msk.f32.gmra.mxu0 %vm67_vm0, %v46_v50 }
  0xa3   :  { %354 = vmatmul.f32.gmra.mxu1 %v280_v52 }
  0xa6   :  { %v193_v53 = vpop.f32.mrf.mxu0 }
  0xa7   :  { %v194_v55 = vadd.f32 %v1040_v36, %v193_v53 }
  0xa9   :  { %v281_v56 = vmax.f32 %v194_v55, 0.0  ;;  %766 = vmatmul.msk.f32.gmra.mxu0 %vm67_vm0, %v47_v54 }
  0xab   :  { %357 = vmatmul.f32.gmra.mxu1 %v281_v56 }
  0xae   :  { %v196_v58 = vpop.f32.mrf.mxu0 }
  0xaf   :  { %v197_v60 = vadd.f32 %v1040_v36, %v196_v58 }
  0xb1   :  { %v282_v61 = vmax.f32 %v197_v60, 0.0  ;;  %767 = vmatmul.msk.f32.gmra.mxu0 %vm67_vm0, %v48_v59 }
  0xb3   :  { %360 = vmatmul.f32.gmra.mxu1 %v282_v61 }
  0xb6   :  { %v199_v63 = vpop.f32.mrf.mxu0 }
  0xb7   :  { %v200_v1 = vadd.f32 %v1040_v36, %v199_v63 }
  0xb9   :  { %v283_v2 = vmax.f32 %v200_v1, 0.0  ;;  %768 = vmatmul.msk.f32.gmra.mxu0 %vm67_vm0, %v49_v0 }
  0xbb   :  { %363 = vmatmul.f32.gmra.mxu1 %v283_v2 }
  0xbe   :  { %v202_v4 = vpop.f32.mrf.mxu0 }
  0xbf   :  { %v203_v6 = vadd.f32 %v1040_v36, %v202_v4 }
  0xc1   :  { %v284_v7 = vmax.f32 %v203_v6, 0.0  ;;  %769 = vmatmul.msk.f32.gmra.mxu0 %vm67_vm0, %v50_v5 }
  0xc3   :  { %366 = vmatmul.f32.gmra.mxu1 %v284_v7 }
  0xc6   :  { %v205_v9 = vpop.f32.mrf.mxu0 }
  0xc7   :  { %v206_v11 = vadd.f32 %v1040_v36, %v205_v9 }
  0xc9   :  { %v285_v12 = vmax.f32 %v206_v11, 0.0  ;;  %770 = vmatmul.msk.f32.gmra.mxu0 %vm67_vm0, %v51_v10 }
  0xcb   :  { %369 = vmatmul.f32.gmra.mxu1 %v285_v12 }
  0xce   :  { %v208_v14 = vpop.f32.mrf.mxu0 }
  0xcf   :  { %v209_v15 = vadd.f32 %v1040_v36, %v208_v14 }
  0xd1   :  { %v286_v16 = vmax.f32 %v209_v15, 0.0 }
  0xd3   :  { %372 = vmatmul.f32.gmra.mxu1 %v286_v16 }
  0xd6   :  { %v211_v18 = vpop.f32.mrf.mxu0 }
  0xd7   :  { %v212_v19 = vadd.f32 %v1040_v36, %v211_v18 }
  0xd9   :  { %v287_v20 = vmax.f32 %v212_v19, 0.0 }
  0xdb   :  { %375 = vmatmul.f32.gmra.mxu1 %v287_v20 }
  0xde   :  { %v214_v23 = vpop.f32.mrf.mxu0 }
  0xdf   :  { %v215_v24 = vadd.f32 %v1040_v36, %v214_v23 }
  0xe1   :  { %v288_v26 = vmax.f32 %v215_v24, 0.0 }
  0xe3   :  { %378 = vmatmul.f32.gmra.mxu1 %v288_v26 }
  0xe6   :  { %v217_v30 = vpop.f32.mrf.mxu0 }
  0xe7   :  { %v218_v31 = vadd.f32 %v1040_v36, %v217_v30 }
  0xe9   :  { %v289_v33 = vmax.f32 %v218_v31, 0.0 }
  0xeb   :  { %381 = vmatmul.f32.gmra.mxu1 %v289_v33  ;;  %v259_v33 = vpop.f32.mrf.mxu3 }
  0xee   :  { %v220_v37 = vpop.f32.mrf.mxu0 }
  0xef   :  { %v221_v38 = vadd.f32 %v1040_v36, %v220_v37 }
  0xf1   :  { %v290_v39 = vmax.f32 %v221_v38, 0.0 }
  0xf3   :  { %384 = vmatmul.f32.gmra.mxu1 %v290_v39 }
  0xf6   :  { %v223_v40 = vpop.f32.mrf.mxu0 }
  0xf7   :  { %v224_v41 = vadd.f32 %v1040_v36, %v223_v40  ;;  %v257_v40 = vadd.f32 %v1040_v36, %v256_v25 }
  0xf9   :  { %v291_v42 = vmax.f32 %v224_v41, 0.0  ;;  %v302_v41 = vmax.f32 %v257_v40, 0.0 }
  0xfb   :  { %387 = vmatmul.f32.gmra.mxu1 %v291_v42 }
  0xfe   :  { %v226_v43 = vpop.f32.mrf.mxu0 }
  0xff   :  { %v227_v44 = vadd.f32 %v1040_v36, %v226_v43  ;;  %v262_v43 = vpop.f32.mrf.mxu3 }
 0x101   :  { %v292_v45 = vmax.f32 %v227_v44, 0.0 }
 0x103   :  { %390 = vmatmul.f32.gmra.mxu1 %v292_v45 }
 0x106   :  { %v229_v47 = vpop.f32.mrf.mxu0 }
 0x107   :  { %v230_v48 = vadd.f32 %v1040_v36, %v229_v47  ;;  %v260_v47 = vadd.f32 %v1040_v36, %v259_v33 }
 0x108   :  { %v346_v49 = vpop.f32.mrf.mxu1 }
 0x109   :  { %v293_v50 = vmax.f32 %v230_v48, 0.0  ;;  %v347_v51 = vadd.f32 %v1149_v46, %v346_v49  ;;  %v303_v48 = vmax.f32 %v260_v47, 0.0 }
 0x10b   :  { %v442_v52 = vmax.f32 %v347_v51, 0.0  ;;  %393 = vmatmul.f32.gmra.mxu1 %v293_v50  ;;  %v265_v51 = vpop.f32.mrf.mxu3 }
 0x10d   :  { %778 = vmatmul.msk.f32.vlgmr.msra.gmra.mxu2 %vm486_vm1, %v442_v52 }
 0x10e   :  { %v232_v53 = vpop.f32.mrf.mxu0 }
 0x10f   :  { %v233_v54 = vadd.f32 %v1040_v36, %v232_v53  ;;  %v263_v53 = vadd.f32 %v1040_v36, %v262_v43 }
 0x110   :  { %v349_v55 = vpop.f32.mrf.mxu1 }
 0x111   :  { %v294_v56 = vmax.f32 %v233_v54, 0.0  ;;  %v350_v57 = vadd.f32 %v1149_v46, %v349_v55  ;;  %v304_v54 = vmax.f32 %v263_v53, 0.0 }
 0x113   :  { %v443_v58 = vmax.f32 %v350_v57, 0.0  ;;  %396 = vmatmul.f32.gmra.mxu1 %v294_v56 }
 0x115   :  { %779 = vmatmul.msk.f32.gmra.mxu2 %vm486_vm1, %v443_v58  ;;  %v266_v58 = vadd.f32 %v1040_v36, %v265_v51 }
 0x116   :  { %v235_v59 = vpop.f32.mrf.mxu0 }
 0x117   :  { %v236_v60 = vadd.f32 %v1040_v36, %v235_v59  ;;  %v268_v59 = vpop.f32.mrf.mxu3 }
 0x118   :  { %v352_v61 = vpop.f32.mrf.mxu1 }
 0x119   :  { %v295_v62 = vmax.f32 %v236_v60, 0.0  ;;  %v353_v63 = vadd.f32 %v1149_v46, %v352_v61  ;;  %v305_v60 = vmax.f32 %v266_v58, 0.0 }
 0x11b   :  { %v444_v0 = vmax.f32 %v353_v63, 0.0  ;;  %399 = vmatmul.f32.gmra.mxu1 %v295_v62 }
 0x11d   :  { %780 = vmatmul.msk.f32.gmra.mxu2 %vm486_vm1, %v444_v0  ;;  %v269_v0 = vadd.f32 %v1040_v36, %v268_v59 }
 0x11e   :  { %v238_v1 = vpop.f32.mrf.mxu0 }
 0x11f   :  { %v239_v2 = vadd.f32 %v1040_v36, %v238_v1  ;;  %v271_v1 = vpop.f32.mrf.mxu3 }
 0x120   :  { %v355_v3 = vpop.f32.mrf.mxu1 }
 0x121   :  { %v296_v4 = vmax.f32 %v239_v2, 0.0  ;;  %v356_v5 = vadd.f32 %v1149_v46, %v355_v3  ;;  %v306_v2 = vmax.f32 %v269_v0, 0.0 }
 0x123   :  { %v445_v6 = vmax.f32 %v356_v5, 0.0  ;;  %402 = vmatmul.f32.gmra.mxu1 %v296_v4 }
 0x125   :  { %781 = vmatmul.msk.f32.gmra.mxu2 %vm486_vm1, %v445_v6  ;;  %v272_v6 = vadd.f32 %v1040_v36, %v271_v1 }
 0x126   :  { %v241_v7 = vpop.f32.mrf.mxu0 }
 0x127   :  { %v242_v8 = vadd.f32 %v1040_v36, %v241_v7  ;;  %v307_v7 = vmax.f32 %v272_v6, 0.0 }
 0x128   :  { %v358_v9 = vpop.f32.mrf.mxu1 }
 0x129   :  { %v297_v10 = vmax.f32 %v242_v8, 0.0  ;;  %v359_v11 = vadd.f32 %v1149_v46, %v358_v9  ;;  %v274_v9 = vpop.f32.mrf.mxu3 }
 0x12b   :  { %v446_v12 = vmax.f32 %v359_v11, 0.0  ;;  %405 = vmatmul.f32.gmra.mxu1 %v297_v10 }
 0x12d   :  { %782 = vmatmul.msk.f32.gmra.mxu2 %vm486_vm1, %v446_v12  ;;  %v275_v12 = vadd.f32 %v1040_v36, %v274_v9 }
 0x12e   :  { %v244_v13 = vpop.f32.mrf.mxu0 }
 0x12f   :  { %v245_v14 = vadd.f32 %v1040_v36, %v244_v13  ;;  %v308_v13 = vmax.f32 %v275_v12, 0.0 }
 0x130   :  { %v361_v15 = vpop.f32.mrf.mxu1 }
 0x131   :  { %v298_v16 = vmax.f32 %v245_v14, 0.0  ;;  %v362_v17 = vadd.f32 %v1149_v46, %v361_v15 }
 0x133   :  { %v447_v18 = vmax.f32 %v362_v17, 0.0  ;;  %408 = vmatmul.f32.gmra.mxu1 %v298_v16 }
 0x135   :  { %783 = vmatmul.msk.f32.gmra.mxu2 %vm486_vm1, %v447_v18 }
 0x136   :  { %v247_v19 = vpop.f32.mrf.mxu0 }
 0x137   :  { %v248_v20 = vadd.f32 %v1040_v36, %v247_v19 }
 0x138   :  { %v364_v21 = vpop.f32.mrf.mxu1 }
 0x139   :  { %v299_v22 = vmax.f32 %v248_v20, 0.0  ;;  %v365_v23 = vadd.f32 %v1149_v46, %v364_v21 }
 0x13b   :  { %v448_v24 = vmax.f32 %v365_v23, 0.0  ;;  %411 = vmatmul.f32.gmra.mxu1 %v299_v22 }
 0x13d   :  { %784 = vmatmul.msk.f32.gmra.mxu2 %vm486_vm1, %v448_v24 }
 0x13e   :  { %v250_v26 = vpop.f32.mrf.mxu0 }
 0x13f   :  { %v251_v27 = vadd.f32 %v1040_v36, %v250_v26 }
 0x140   :  { %v367_v28 = vpop.f32.mrf.mxu1 }
 0x141   :  { %v300_v29 = vmax.f32 %v251_v27, 0.0  ;;  %v368_v30 = vadd.f32 %v1149_v46, %v367_v28 }
 0x143   :  { %v449_v31 = vmax.f32 %v368_v30, 0.0  ;;  %414 = vmatmul.f32.vlgmr.msrb.gmra.mxu3 %v300_v29 }
 0x145   :  { %785 = vmatmul.msk.f32.gmra.mxu2 %vm486_vm1, %v449_v31 }
 0x146   :  { %v253_v32 = vpop.f32.mrf.mxu0 }
 0x147   :  { %v254_v34 = vadd.f32 %v1040_v36, %v253_v32  ;;  %v1204_v36 = vld [vmem:[%s1277_s6] ss:$0 sm:$0xff]  ;;  %s870_s6 = smov [#allocation2]  }
 0x148   :  { %v370_v35 = vpop.f32.mrf.mxu1  ;;  %s732_s23 = sshll.u32 %s870_s6, 4  ;;  %s733_s23 = int_to_ptr.vmem [resolvable:$true] %s732_s23 }
 0x149   :  { %v301_v37 = vmax.f32 %v254_v34, 0.0  ;;  %v371_v38 = vadd.f32 %v1149_v46, %v370_v35 }
 0x14b   :  { %v450_v39 = vmax.f32 %v371_v38, 0.0  ;;  %417 = vmatmul.f32.gmra.mxu3 %v301_v37 }
 0x14d   :  { %786 = vmatmul.msk.f32.gmra.mxu2 %vm486_vm1, %v450_v39 }
 0x150   :  { %v373_v42 = vpop.f32.mrf.mxu1 }
 0x151   :  { %v374_v44 = vadd.f32 %v1149_v46, %v373_v42 }
 0x153   :  { %v451_v45 = vmax.f32 %v374_v44, 0.0  ;;  %420 = vmatmul.f32.gmra.mxu3 %v302_v41 }
 0x155   :  { %787 = vmatmul.msk.f32.gmra.mxu2 %vm486_vm1, %v451_v45 }
 0x158   :  { %v376_v49 = vpop.f32.mrf.mxu1 }
 0x159   :  { %v377_v50 = vadd.f32 %v1149_v46, %v376_v49 }
 0x15b   :  { %v452_v52 = vmax.f32 %v377_v50, 0.0  ;;  %423 = vmatmul.f32.gmra.mxu3 %v303_v48 }
 0x15d   :  { %788 = vmatmul.msk.f32.gmra.mxu2 %vm486_vm1, %v452_v52 }
 0x160   :  { %v379_v55 = vpop.f32.mrf.mxu1 }
 0x161   :  { %v380_v56 = vadd.f32 %v1149_v46, %v379_v55 }
 0x163   :  { %v453_v57 = vmax.f32 %v380_v56, 0.0  ;;  %426 = vmatmul.f32.gmra.mxu3 %v304_v54 }
 0x165   :  { %789 = vmatmul.msk.f32.gmra.mxu2 %vm486_vm1, %v453_v57 }
 0x168   :  { %v382_v61 = vpop.f32.mrf.mxu1 }
 0x169   :  { %v383_v62 = vadd.f32 %v1149_v46, %v382_v61 }
 0x16b   :  { %v454_v63 = vmax.f32 %v383_v62, 0.0  ;;  %429 = vmatmul.f32.gmra.mxu3 %v305_v60 }
 0x16d   :  { %790 = vmatmul.msk.f32.gmra.mxu2 %vm486_vm1, %v454_v63 }
 0x170   :  { %v385_v3 = vpop.f32.mrf.mxu1 }
 0x171   :  { %v386_v4 = vadd.f32 %v1149_v46, %v385_v3 }
 0x173   :  { %v455_v5 = vmax.f32 %v386_v4, 0.0  ;;  %432 = vmatmul.f32.gmra.mxu3 %v306_v2 }
 0x175   :  { %791 = vmatmul.msk.f32.gmra.mxu2 %vm486_vm1, %v455_v5 }
 0x178   :  { %v388_v8 = vpop.f32.mrf.mxu1 }
 0x179   :  { %v389_v10 = vadd.f32 %v1149_v46, %v388_v8 }
 0x17b   :  { %v456_v11 = vmax.f32 %v389_v10, 0.0  ;;  %435 = vmatmul.f32.gmra.mxu3 %v307_v7 }
 0x17d   :  { %792 = vmatmul.msk.f32.gmra.mxu2 %vm486_vm1, %v456_v11 }
 0x180   :  { %v391_v14 = vpop.f32.mrf.mxu1 }
 0x181   :  { %v392_v15 = vadd.f32 %v1149_v46, %v391_v14 }
 0x183   :  { %v457_v16 = vmax.f32 %v392_v15, 0.0  ;;  %438 = vmatmul.f32.gmra.mxu3 %v308_v13 }
 0x185   :  { %793 = vmatmul.msk.f32.gmra.mxu2 %vm486_vm1, %v457_v16 }
 0x188   :  { %v394_v17 = vpop.f32.mrf.mxu1 }
 0x189   :  { %v395_v18 = vadd.f32 %v1149_v46, %v394_v17 }
 0x18b   :  { %v458_v19 = vmax.f32 %v395_v18, 0.0 }
 0x18d   :  { %794 = vmatmul.msk.f32.gmra.mxu2 %vm486_vm1, %v458_v19 }
 0x190   :  { %v397_v20 = vpop.f32.mrf.mxu1  ;;  %v600_v21 = vpop.f32.mrf.mxu2 }
 0x191   :  { %v398_v22 = vadd.f32 %v1149_v46, %v397_v20  ;;  %v601_v23 = vadd.f32 %v1204_v36, %v600_v21 }
 0x193   :  { %v459_v24 = vmax.f32 %v398_v22, 0.0  ;;  %696 = vst [vmem:[#allocation2] sm:$0xff] %v601_v23 }
 0x195   :  { %795 = vmatmul.msk.f32.gmra.mxu2 %vm486_vm1, %v459_v24 }
 0x198   :  { %v400_v25 = vpop.f32.mrf.mxu1  ;;  %v603_v26 = vpop.f32.mrf.mxu2 }
 0x199   :  { %v401_v27 = vadd.f32 %v1149_v46, %v400_v25  ;;  %v604_v28 = vadd.f32 %v1204_v36, %v603_v26 }
 0x19b   :  { %v460_v29 = vmax.f32 %v401_v27, 0.0  ;;  %697 = vst [vmem:[#allocation2 + $0x8] sm:$0xff] %v604_v28 }
 0x19d   :  { %796 = vmatmul.msk.f32.gmra.mxu2 %vm486_vm1, %v460_v29 }
 0x1a0   :  { %v403_v30 = vpop.f32.mrf.mxu1  ;;  %v606_v31 = vpop.f32.mrf.mxu2 }
 0x1a1   :  { %v404_v32 = vadd.f32 %v1149_v46, %v403_v30  ;;  %v607_v33 = vadd.f32 %v1204_v36, %v606_v31 }
 0x1a3   :  { %v461_v34 = vmax.f32 %v404_v32, 0.0  ;;  %698 = vst [vmem:[#allocation2 + $0x10] sm:$0xff] %v607_v33 }
 0x1a5   :  { %797 = vmatmul.msk.f32.gmra.mxu2 %vm486_vm1, %v461_v34 }
 0x1a8   :  { %v406_v35 = vpop.f32.mrf.mxu1  ;;  %v609_v37 = vpop.f32.mrf.mxu2 }
 0x1a9   :  { %v407_v38 = vadd.f32 %v1149_v46, %v406_v35  ;;  %v610_v39 = vadd.f32 %v1204_v36, %v609_v37 }
 0x1ab   :  { %v462_v40 = vmax.f32 %v407_v38, 0.0  ;;  %699 = vst [vmem:[#allocation2 + $0x18] sm:$0xff] %v610_v39 }
 0x1ad   :  { %798 = vmatmul.msk.f32.gmra.mxu2 %vm486_vm1, %v462_v40 }
 0x1b0   :  { %v409_v41 = vpop.f32.mrf.mxu1  ;;  %v612_v42 = vpop.f32.mrf.mxu2 }
 0x1b1   :  { %v410_v43 = vadd.f32 %v1149_v46, %v409_v41  ;;  %v613_v44 = vadd.f32 %v1204_v36, %v612_v42 }
 0x1b3   :  { %v463_v45 = vmax.f32 %v410_v43, 0.0  ;;  %700 = vst [vmem:[#allocation2 + $0x20] sm:$0xff] %v613_v44 }
 0x1b5   :  { %799 = vmatmul.msk.f32.gmra.mxu2 %vm486_vm1, %v463_v45 }
 0x1b8   :  { %v412_v47 = vpop.f32.mrf.mxu1  ;;  %v615_v48 = vpop.f32.mrf.mxu2 }
 0x1b9   :  { %v413_v49 = vadd.f32 %v1149_v46, %v412_v47  ;;  %v616_v50 = vadd.f32 %v1204_v36, %v615_v48 }
 0x1bb   :  { %v464_v51 = vmax.f32 %v413_v49, 0.0  ;;  %701 = vst [vmem:[#allocation2 + $0x28] sm:$0xff] %v616_v50 }
 0x1bd   :  { %800 = vmatmul.msk.f32.gmra.mxu2 %vm486_vm1, %v464_v51 }
 0x1c0   :  { %v618_v52 = vpop.f32.mrf.mxu2 }
 0x1c1   :  { %v619_v53 = vadd.f32 %v1204_v36, %v618_v52 }
 0x1c3   :  { %702 = vst [vmem:[#allocation2 + $0x30] sm:$0xff] %v619_v53 }
 0x1c6   :  { %v415_v54 = vpop.f32.mrf.mxu3 }
 0x1c7   :  { %v416_v55 = vadd.f32 %v1149_v46, %v415_v54 }
 0x1c8   :  { %v621_v56 = vpop.f32.mrf.mxu2 }
 0x1c9   :  { %v465_v57 = vmax.f32 %v416_v55, 0.0  ;;  %v622_v58 = vadd.f32 %v1204_v36, %v621_v56 }
 0x1cb   :  { %703 = vst [vmem:[#allocation2 + $0x38] sm:$0xff] %v622_v58  ;;  %801 = vmatmul.msk.f32.gmra.mxu2 %vm486_vm1, %v465_v57 }
 0x1ce   :  { %v418_v59 = vpop.f32.mrf.mxu3 }
 0x1cf   :  { %v419_v60 = vadd.f32 %v1149_v46, %v418_v59 }
 0x1d0   :  { %v624_v61 = vpop.f32.mrf.mxu2 }
 0x1d1   :  { %v466_v62 = vmax.f32 %v419_v60, 0.0  ;;  %v625_v63 = vadd.f32 %v1204_v36, %v624_v61 }
 0x1d3   :  { %704 = vst [vmem:[#allocation2 + $0x40] sm:$0xff] %v625_v63  ;;  %802 = vmatmul.msk.f32.gmra.mxu2 %vm486_vm1, %v466_v62 }
 0x1d6   :  { %v421_v0 = vpop.f32.mrf.mxu3 }
 0x1d7   :  { %v422_v1 = vadd.f32 %v1149_v46, %v421_v0 }
 0x1d8   :  { %v627_v2 = vpop.f32.mrf.mxu2 }
 0x1d9   :  { %v467_v3 = vmax.f32 %v422_v1, 0.0  ;;  %v628_v4 = vadd.f32 %v1204_v36, %v627_v2 }
 0x1db   :  { %705 = vst [vmem:[#allocation2 + $0x48] sm:$0xff] %v628_v4  ;;  %803 = vmatmul.msk.f32.vlgmr.msra.gmra.mxu3 %vm486_vm1, %v467_v3 }
 0x1de   :  { %v424_v5 = vpop.f32.mrf.mxu3 }
 0x1df   :  { %v425_v6 = vadd.f32 %v1149_v46, %v424_v5 }
 0x1e0   :  { %v630_v7 = vpop.f32.mrf.mxu2 }
 0x1e1   :  { %v468_v8 = vmax.f32 %v425_v6, 0.0  ;;  %v631_v9 = vadd.f32 %v1204_v36, %v630_v7 }
 0x1e3   :  { %706 = vst [vmem:[#allocation2 + $0x50] sm:$0xff] %v631_v9  ;;  %804 = vmatmul.msk.f32.gmra.mxu3 %vm486_vm1, %v468_v8 }
 0x1e6   :  { %v427_v10 = vpop.f32.mrf.mxu3 }
 0x1e7   :  { %v428_v11 = vadd.f32 %v1149_v46, %v427_v10 }
 0x1e8   :  { %v633_v12 = vpop.f32.mrf.mxu2 }
 0x1e9   :  { %v469_v13 = vmax.f32 %v428_v11, 0.0  ;;  %v634_v14 = vadd.f32 %v1204_v36, %v633_v12 }
 0x1eb   :  { %707 = vst [vmem:[#allocation2 + $0x58] sm:$0xff] %v634_v14  ;;  %805 = vmatmul.msk.f32.gmra.mxu3 %vm486_vm1, %v469_v13 }
 0x1ee   :  { %v430_v15 = vpop.f32.mrf.mxu3 }
 0x1ef   :  { %v431_v16 = vadd.f32 %v1149_v46, %v430_v15 }
 0x1f0   :  { %v636_v17 = vpop.f32.mrf.mxu2 }
 0x1f1   :  { %v470_v18 = vmax.f32 %v431_v16, 0.0  ;;  %v637_v19 = vadd.f32 %v1204_v36, %v636_v17 }
 0x1f3   :  { %708 = vst [vmem:[#allocation2 + $0x60] sm:$0xff] %v637_v19  ;;  %806 = vmatmul.msk.f32.gmra.mxu3 %vm486_vm1, %v470_v18 }
 0x1f6   :  { %v433_v20 = vpop.f32.mrf.mxu3 }
 0x1f7   :  { %v434_v21 = vadd.f32 %v1149_v46, %v433_v20 }
 0x1f8   :  { %v639_v22 = vpop.f32.mrf.mxu2 }
 0x1f9   :  { %v471_v23 = vmax.f32 %v434_v21, 0.0  ;;  %v640_v24 = vadd.f32 %v1204_v36, %v639_v22 }
 0x1fb   :  { %709 = vst [vmem:[#allocation2 + $0x68] sm:$0xff] %v640_v24  ;;  %807 = vmatmul.msk.f32.gmra.mxu3 %vm486_vm1, %v471_v23 }
 0x1fe   :  { %v436_v25 = vpop.f32.mrf.mxu3 }
 0x1ff   :  { %v437_v26 = vadd.f32 %v1149_v46, %v436_v25 }
 0x200   :  { %v642_v27 = vpop.f32.mrf.mxu2 }
 0x201   :  { %v472_v28 = vmax.f32 %v437_v26, 0.0  ;;  %v643_v29 = vadd.f32 %v1204_v36, %v642_v27 }
 0x203   :  { %710 = vst [vmem:[#allocation2 + $0x70] sm:$0xff] %v643_v29  ;;  %808 = vmatmul.msk.f32.gmra.mxu3 %vm486_vm1, %v472_v28 }
 0x206   :  { %v439_v30 = vpop.f32.mrf.mxu3 }
 0x207   :  { %v440_v31 = vadd.f32 %v1149_v46, %v439_v30 }
 0x208   :  { %v645_v32 = vpop.f32.mrf.mxu2 }
 0x209   :  { %v473_v33 = vmax.f32 %v440_v31, 0.0  ;;  %v646_v34 = vadd.f32 %v1204_v36, %v645_v32 }
 0x20b   :  { %711 = vst [vmem:[#allocation2 + $0x78] sm:$0xff] %v646_v34  ;;  %809 = vmatmul.msk.f32.gmra.mxu3 %vm486_vm1, %v473_v33 }
 0x210   :  { %v648_v35 = vpop.f32.mrf.mxu2 }
 0x211   :  { %v649_v37 = vadd.f32 %v1204_v36, %v648_v35 }
 0x213   :  { %712 = vst [vmem:[#allocation2 + $0x80] sm:$0xff] %v649_v37 }
 0x218   :  { %v651_v38 = vpop.f32.mrf.mxu2 }
 0x219   :  { %v652_v39 = vadd.f32 %v1204_v36, %v651_v38 }
 0x21b   :  { %713 = vst [vmem:[#allocation2 + $0x88] sm:$0xff] %v652_v39 }
 0x220   :  { %v654_v40 = vpop.f32.mrf.mxu2 }
 0x221   :  { %v655_v41 = vadd.f32 %v1204_v36, %v654_v40 }
 0x223   :  { %714 = vst [vmem:[#allocation2 + $0x90] sm:$0xff] %v655_v41 }
 0x228   :  { %v657_v46 = vpop.f32.mrf.mxu2 }
 0x229   :  { %v658_v42 = vadd.f32 %v1204_v36, %v657_v46 }
 0x22b   :  { %715 = vst [vmem:[#allocation2 + $0x98] sm:$0xff] %v658_v42 }
 0x230   :  { %v660_v43 = vpop.f32.mrf.mxu2 }
 0x231   :  { %v661_v44 = vadd.f32 %v1204_v36, %v660_v43 }
 0x233   :  { %716 = vst [vmem:[#allocation2 + $0xa0] sm:$0xff] %v661_v44 }
 0x238   :  { %v663_v45 = vpop.f32.mrf.mxu2 }
 0x239   :  { %v664_v47 = vadd.f32 %v1204_v36, %v663_v45 }
 0x23b   :  { %717 = vst [vmem:[#allocation2 + $0xa8] sm:$0xff] %v664_v47 }
 0x240   :  { %v666_v48 = vpop.f32.mrf.mxu2 }
 0x241   :  { %v667_v49 = vadd.f32 %v1204_v36, %v666_v48 }
 0x243   :  { %718 = vst [vmem:[#allocation2 + $0xb0] sm:$0xff] %v667_v49 }
 0x24e   :  { %v669_v50 = vpop.f32.mrf.mxu2 }
 0x24f   :  { %v670_v51 = vadd.f32 %v1204_v36, %v669_v50 }
 0x251   :  { %719 = vst [vmem:[#allocation2 + $0xb8] sm:$0xff] %v670_v51 }
 0x256   :  { %v672_v52 = vpop.f32.mrf.mxu2 }
 0x257   :  { %v673_v53 = vadd.f32 %v1204_v36, %v672_v52 }
 0x259   :  { %720 = vst [vmem:[#allocation2 + $0xc0] sm:$0xff] %v673_v53 }
 0x25e   :  { %v675_v54 = vpop.f32.mrf.mxu3 }
 0x25f   :  { %v676_v55 = vadd.f32 %v1204_v36, %v675_v54 }
 0x261   :  { %721 = vst [vmem:[#allocation2 + $0xc8] sm:$0xff] %v676_v55 }
 0x266   :  { %v678_v56 = vpop.f32.mrf.mxu3 }
 0x267   :  { %v679_v57 = vadd.f32 %v1204_v36, %v678_v56 }
 0x269   :  { %722 = vst [vmem:[#allocation2 + $0xd0] sm:$0xff] %v679_v57 }
 0x26e   :  { %v681_v58 = vpop.f32.mrf.mxu3 }
 0x26f   :  { %v682_v59 = vadd.f32 %v1204_v36, %v681_v58 }
 0x271   :  { %723 = vst [vmem:[#allocation2 + $0xd8] sm:$0xff] %v682_v59 }
 0x276   :  { %v684_v60 = vpop.f32.mrf.mxu3 }
 0x277   :  { %v685_v61 = vadd.f32 %v1204_v36, %v684_v60 }
 0x279   :  { %724 = vst [vmem:[#allocation2 + $0xe0] sm:$0xff] %v685_v61 }
 0x27e   :  { %v687_v62 = vpop.f32.mrf.mxu3 }
 0x27f   :  { %v688_v63 = vadd.f32 %v1204_v36, %v687_v62 }
 0x281   :  { %725 = vst [vmem:[#allocation2 + $0xe8] sm:$0xff] %v688_v63 }
 0x286   :  { %v690_v0 = vpop.f32.mrf.mxu3 }
 0x287   :  { %v691_v1 = vadd.f32 %v1204_v36, %v690_v0 }
 0x289   :  { %726 = vst [vmem:[#allocation2 + $0xf0] sm:$0xff] %v691_v1 }
 0x28e   :  { %v693_v2 = vpop.f32.mrf.mxu3 }
 0x28f   :  { %v694_v3 = vadd.f32 %v1204_v36, %v693_v2 }
 0x291   :  { %727 = vst [vmem:[#allocation2 + $0xf8] sm:$0xff] %v694_v3 }
 0x292   :  { %740 = dma.vmem_to_hbm [thread:$0]  %s733_s23, 4096, %s735_s25, [#allocation3], %s871_s26, %s871_s26, %s872_s27  }
 0x293   :  { %868 = dma.done.wait [#allocation3], 4096  }
 0x294   :  { %869 = vsyncadd [#allocation3], 4294963200 }
 0x295   :  { %745 = vsyncpa [#allocation3], 1 }

</bundles_post_ra>
